<compile_context>
chip_gen: v5e
topology: v5e:2x2
jax: 0.10.0
libtpu: 0.0.40
codegen_flags: <defaults>
</compile_context>

<pallas_src>
from functools import partial

import jax
import jax.numpy as jnp
from jax.experimental import pallas as pl
from jax.experimental.pallas import tpu as pltpu


def _round_up(x, m):
    return (x + m - 1) // m * m


# ----------------------------------------------------------------------------
# VMEM planning
# ----------------------------------------------------------------------------
def _vmem_plan():
    """Return (vmem_limit_bytes, tile-planning budget) with compiler headroom."""
    try:
        cap = int(pltpu.get_tpu_info().vmem_capacity_bytes)
    except Exception:
        cap = 64 << 20  # conservative fallback (v7x-sized per-TC VMEM)
    limit = int(cap * 0.8)      # raise the default scoped-VMEM limit explicitly
    budget = int(limit * 0.85)  # planning headroom below the limit
    return limit, budget


def _plan_tiles(M, Hp, L, budget):
    """Pick M tile and whether the whole weight stack can stay VMEM-resident."""
    m8 = _round_up(max(M, 8), 8)
    # Per-row VMEM bytes: x (bf16, 2 bufs) + out (f32, 2 bufs) + h scratch (bf16).
    per_row = Hp * (2 * 2 + 4 * 2 + 2)
    bias_res = 2 * L * 8 * Hp * 4                   # (L,1,Hp) f32, sublane-padded
    w_res = 2 * L * Hp * Hp * 2 + bias_res          # whole stack (x2: conservative)
    w_str = 2 * Hp * Hp * 2 + bias_res              # one double-buffered layer

    resident = w_res + per_row * min(m8, 256) <= budget
    fixed = w_res if resident else w_str
    cap_rows = max((budget - fixed) // per_row, 8)
    tm = min(m8, 1024, cap_rows)
    tm = (tm // 128) * 128 if tm >= 128 else _round_up(tm, 8)
    tm = max(tm, 8)
    # v7x megacore: give both TensorCores an M tile when M is large enough
    # (cheap when weights are resident: weight traffic does not scale with tiles).
    if resident and m8 >= 256 and _round_up(M, tm) // tm < 2:
        tm = max(((tm // 2) // 128) * 128, 128)
    return tm, resident


# ----------------------------------------------------------------------------
# Kernel A (preferred): whole weight stack resident in VMEM, layers unrolled.
# ----------------------------------------------------------------------------
def _make_resident_kernel(flags):
    L = len(flags)

    def kernel(x_ref, w_ref, b_ref, o_ref, h_ref):
        # x_ref: (tm, Hp) bf16 | w_ref: (L, Hp, Hp) bf16 | b_ref: (L, 1, Hp) f32
        # o_ref: (tm, Hp) f32  | h_ref: (tm, Hp) bf16 scratch (inter-layer carry)
        for l in range(L):
            h = x_ref[...] if l == 0 else h_ref[...]
            acc = jnp.dot(h, w_ref[l], preferred_element_type=jnp.float32)
            acc = acc + b_ref[l]
            if flags[l]:                 # static flag -> GELU baked in at trace time
                acc = jax.nn.gelu(acc)
            if l == L - 1:
                o_ref[...] = acc         # last layer writes the f32 output directly
            else:
                h_ref[...] = acc.astype(h_ref.dtype)

    return kernel


# ----------------------------------------------------------------------------
# Kernel B (fallback): stream one layer's weights per grid step.
# ----------------------------------------------------------------------------
def _streamed_kernel(act_ref, x_ref, w_ref, b_ref, o_ref, h_ref):
    # act_ref : SMEM (L,) int32   1 -> GELU, 0 -> identity (scalar prefetch)
    # x_ref   : (tm, Hp) bf16     input activations (consumed at layer 0)
    # w_ref   : (Hp, Hp) bf16     current layer weights (leading L dim squeezed)
    # b_ref   : (L, 1, Hp) f32    all biases, resident
    # o_ref   : (tm, Hp) f32      output (written once, on the last layer)
    # h_ref   : (tm, Hp) bf16     scratch: activation resident across layers
    l = pl.program_id(1)
    last = pl.num_programs(1) - 1

    @pl.when(l == 0)
    def _init():
        h_ref[...] = x_ref[...]

    acc = jnp.dot(h_ref[...], w_ref[...], preferred_element_type=jnp.float32)
    acc = acc + b_ref[l]
    do_gelu = act_ref[l] == 1

    def _store(val):
        @pl.when(l < last)
        def _carry():
            h_ref[...] = val.astype(h_ref.dtype)

        @pl.when(l == last)
        def _emit():
            o_ref[...] = val.astype(o_ref.dtype)

    # Scalar-predicated activation: GELU is only evaluated when the flag says so.
    @pl.when(do_gelu)
    def _act():
        _store(jax.nn.gelu(acc))

    @pl.when(jnp.logical_not(do_gelu))
    def _noact():
        _store(acc)


# ----------------------------------------------------------------------------
# Wrapper: single pallas_call over pre-padded, pre-stacked weights.
# ----------------------------------------------------------------------------
@partial(jax.jit, static_argnames=("flags",))
def fused_part_forward(x2d, w_pad, b_pad, *, flags):
    """x2d: (M, H) f32, w_pad: (L, Hp, Hp) bf16, b_pad: (L, 1, Hp) f32,
    flags: static tuple (1 = GELU after layer, 0 = identity)."""
    M, H = x2d.shape
    L, Hp, _ = w_pad.shape

    limit, budget = _vmem_plan()
    tm, resident = _plan_tiles(M, Hp, L, budget)
    Mp = _round_up(M, tm)

    x_pad = jnp.zeros((Mp, Hp), jnp.bfloat16).at[:M, :H].set(
        x2d.astype(jnp.bfloat16))

    n_gelu = int(sum(flags))
    cost = pl.CostEstimate(
        flops=2 * Mp * Hp * Hp * L,
        transcendentals=Mp * Hp * n_gelu,
        bytes_accessed=(x_pad.size * 2 + w_pad.size * 2 + b_pad.size * 4
                        + Mp * Hp * 4),
    )
    out_shape = jax.ShapeDtypeStruct((Mp, Hp), jnp.float32)
    scratch = [pltpu.VMEM((tm, Hp), jnp.bfloat16)]

    if resident:
        out = pl.pallas_call(
            _make_resident_kernel(flags),
            out_shape=out_shape,
            grid_spec=pltpu.PrefetchScalarGridSpec(
                num_scalar_prefetch=0,
                grid=(Mp // tm,),
                in_specs=[
                    pl.BlockSpec((tm, Hp), lambda m: (m, 0)),
                    # Constant block index -> weight/bias stacks DMA'd once for the
                    # whole kernel; no per-layer or per-M-tile refetch.
                    pl.BlockSpec((L, Hp, Hp), lambda m: (0, 0, 0)),
                    pl.BlockSpec((L, 1, Hp), lambda m: (0, 0, 0)),
                ],
                out_specs=pl.BlockSpec((tm, Hp), lambda m: (m, 0)),
                scratch_shapes=scratch,
            ),
            compiler_params=pltpu.CompilerParams(
                dimension_semantics=("parallel",),
                vmem_limit_bytes=limit),
            cost_estimate=cost,
        )(x_pad, w_pad, b_pad)
    else:
        # TODO(synk): add an output-column (N) tile axis for very large Hp on v7x,
        # where a full double-buffered (Hp, Hp) bf16 block would exceed 64 MiB VMEM.
        act = jnp.asarray(flags, dtype=jnp.int32)
        out = pl.pallas_call(
            _streamed_kernel,
            out_shape=out_shape,
            grid_spec=pltpu.PrefetchScalarGridSpec(
                num_scalar_prefetch=1,
                grid=(Mp // tm, L),
                in_specs=[
                    pl.BlockSpec((tm, Hp), lambda m, l, acts: (m, 0)),
                    pl.BlockSpec((None, Hp, Hp), lambda m, l, acts: (l, 0, 0)),
                    pl.BlockSpec((L, 1, Hp), lambda m, l, acts: (0, 0, 0)),
                ],
                out_specs=pl.BlockSpec((tm, Hp), lambda m, l, acts: (m, 0)),
                scratch_shapes=scratch,
            ),
            compiler_params=pltpu.CompilerParams(
                dimension_semantics=("parallel", "arbitrary"),
                vmem_limit_bytes=limit),
            cost_estimate=cost,
        )(act, x_pad, w_pad, b_pad)

    return out[:M, :H]


# ----------------------------------------------------------------------------
# Deterministic parameter construction (mimics nn.Linear default init shapes)
# ----------------------------------------------------------------------------
def _make_linear_params(key, in_dim, out_dim):
    kw, kb = jax.random.split(key)
    bound = 1.0 / jnp.sqrt(jnp.float32(in_dim))
    w = jax.random.uniform(kw, (in_dim, out_dim), jnp.float32, -bound, bound)
    b = jax.random.uniform(kb, (out_dim,), jnp.float32, -bound, bound)
    return {"w": w, "b": b}


# ----------------------------------------------------------------------------
# JAX/Pallas equivalent of the `Part` container.
#   begin : Linear(hidden -> hidden)
#   mid   : {i: Linear(hidden -> hidden) + GELU}  for i in mid_range
#   end   : Linear(hidden -> hidden)
# Forward applies begin, every mid layer in order, then end — same sequential
# semantics as Part.forward — executed as ONE fused kernel.
# ----------------------------------------------------------------------------
class Part:
    def __init__(self, hidden, mid_range=None, *, with_begin=True, with_end=True,
                 key=jax.random.PRNGKey(0)):
        if mid_range is not None:
            assert isinstance(mid_range, range), "mid_range must be a range object."
        n_mid = len(mid_range) if mid_range is not None else 0
        keys = jax.random.split(key, 2 + n_mid)

        self.begin = _make_linear_params(keys[0], hidden, hidden) if with_begin else None
        self.mid = (
            {str(i): _make_linear_params(keys[2 + j], hidden, hidden)
             for j, i in enumerate(mid_range)}
            if mid_range is not None else None
        )
        self.end = _make_linear_params(keys[1], hidden, hidden) if with_end else None
        self.hidden = hidden

        # -------- hoisted out of forward(): stack + pad + bf16-cast ONCE --------
        layers, flags = [], []
        if self.begin is not None:
            layers.append(self.begin); flags.append(0)
        if self.mid is not None:
            for _idx, layer in self.mid.items():      # ordered, like nn.ModuleDict
                layers.append(layer); flags.append(1)
        if self.end is not None:
            layers.append(self.end); flags.append(0)
        self._layers, self._flags = layers, tuple(flags)

        L, H = len(layers), hidden
        if L:
            Hp = _round_up(max(H, 128), 128)          # lane-dense last dim
            w_stack = jnp.stack([p["w"] for p in layers])
            b_stack = jnp.stack([p["b"] for p in layers])
            self._w_pad = jnp.zeros((L, Hp, Hp), jnp.bfloat16).at[:, :H, :H].set(
                w_stack.astype(jnp.bfloat16))
            self._b_pad = jnp.zeros((L, 1, Hp), jnp.float32).at[:, 0, :H].set(
                b_stack.astype(jnp.float32))
        else:
            self._w_pad = None
            self._b_pad = None

    def forward(self, x):
        # x: [batch, seq, hidden] float32
        B, S, H = x.shape
        if not self._layers:
            return x
        out = fused_part_forward(x.reshape(B * S, H), self._w_pad, self._b_pad,
                                 flags=self._flags)
        return out.reshape(B, S, H)

    __call__ = forward


if __name__ == "__main__":
    batch, seq, hidden = 2, 8, 32
    key = jax.random.PRNGKey(0)
    kx, kp = jax.random.split(key)

    x = jax.random.normal(kx, (batch, seq, hidden), dtype=jnp.float32)

    part = Part(hidden, mid_range=range(0, 3), with_begin=True, with_end=True, key=kp)
    out = jax.block_until_ready(part(x))

    # Plain-JAX reference with the same bf16-operand / f32-accumulate math.
    def ref_forward(xin):
        h = xin.reshape(batch * seq, hidden)
        for p, flag in zip(part._layers, part._flags):
            acc = jnp.dot(h.astype(jnp.bfloat16), p["w"].astype(jnp.bfloat16),
                          preferred_element_type=jnp.float32)
            acc = acc + p["b"]
            if flag:
                acc = jax.nn.gelu(acc)
            h = acc
        return h.reshape(batch, seq, hidden)

    ref = ref_forward(x)
    assert out.shape == (batch, seq, hidden)
    assert jnp.allclose(out, ref, atol=2e-2, rtol=2e-2), (
        float(jnp.max(jnp.abs(out - ref))))
    print("KERNEL_OK")
</pallas_src>

<mosaic_0001>
module attributes {stable_mosaic.version = 11 : i64} {
  func.func @kernel(%arg0: i32, %arg1: memref<16x128xbf16, #tpu.memory_space<vmem>>, %arg2: memref<5x128x128xbf16, #tpu.memory_space<vmem>>, %arg3: memref<5x1x128xf32, #tpu.memory_space<vmem>>, %arg4: memref<16x128xf32, #tpu.memory_space<vmem>>, %arg5: memref<16x128xbf16, #tpu.memory_space<vmem>>) attributes {dimension_semantics = [#tpu.dimension_semantics<parallel>], iteration_bounds = array<i64: 1>, scalar_prefetch = 0 : i64, scratch_operands = 1 : i64, tpu.core_type = #tpu.core_type<tc>, window_params = [{transform_indices = @transform_0, window_bounds = array<i64: 16, 128>}, {pipeline_mode = #tpu.pipeline_mode<synchronous>, transform_indices = @transform_1, window_bounds = array<i64: 5, 128, 128>}, {pipeline_mode = #tpu.pipeline_mode<synchronous>, transform_indices = @transform_2, window_bounds = array<i64: 5, 1, 128>}, {transform_indices = @transform_3, window_bounds = array<i64: 16, 128>}]} {
    %c0 = arith.constant 0 : index
    %c0_0 = arith.constant 0 : index
    %0 = vector.load %arg1[%c0, %c0_0] : memref<16x128xbf16, #tpu.memory_space<vmem>>, vector<16x128xbf16>
    %c0_1 = arith.constant 0 : index
    %c0_2 = arith.constant 0 : index
    %c0_3 = arith.constant 0 : index
    %1 = vector.load %arg2[%c0_1, %c0_2, %c0_3] : memref<5x128x128xbf16, #tpu.memory_space<vmem>>, vector<1x128x128xbf16>
    %2 = vector.shape_cast %1 : vector<1x128x128xbf16> to vector<128x128xbf16>
    %cst = arith.constant dense<0.000000e+00> : vector<16x128xf32>
    %3 = tpu.matmul %0, %2, %cst {dimension_numbers = #tpu.dot_dimension_numbers<[1], [0], [0], [1], [0, 0, 1, 1], [], []>} : vector<16x128xbf16>, vector<128x128xbf16>, vector<16x128xf32> -> vector<16x128xf32>
    %c0_4 = arith.constant 0 : index
    %c0_5 = arith.constant 0 : index
    %c0_6 = arith.constant 0 : index
    %4 = vector.load %arg3[%c0_4, %c0_5, %c0_6] : memref<5x1x128xf32, #tpu.memory_space<vmem>>, vector<1x1x128xf32>
    %5 = vector.shape_cast %4 : vector<1x1x128xf32> to vector<1x128xf32>
    %6 = vector.broadcast %5 : vector<1x128xf32> to vector<16x128xf32>
    %7 = arith.addf %3, %6 : vector<16x128xf32>
    %8 = arith.truncf %7 : vector<16x128xf32> to vector<16x128xbf16>
    %c0_7 = arith.constant 0 : index
    %c0_8 = arith.constant 0 : index
    %9 = vector.load %arg5[%c0_7, %c0_8] : memref<16x128xbf16, #tpu.memory_space<vmem>>, vector<16x128xbf16>
    tpu.vector_store %arg5[%c0_7, %c0_8], %8 {strides = array<i32>} : memref<16x128xbf16, #tpu.memory_space<vmem>>, vector<16x128xbf16>,
    %c0_9 = arith.constant 0 : index
    %c0_10 = arith.constant 0 : index
    %10 = vector.load %arg5[%c0_9, %c0_10] : memref<16x128xbf16, #tpu.memory_space<vmem>>, vector<16x128xbf16>
    %c1 = arith.constant 1 : index
    %c0_11 = arith.constant 0 : index
    %c0_12 = arith.constant 0 : index
    %11 = vector.load %arg2[%c1, %c0_11, %c0_12] : memref<5x128x128xbf16, #tpu.memory_space<vmem>>, vector<1x128x128xbf16>
    %12 = vector.shape_cast %11 : vector<1x128x128xbf16> to vector<128x128xbf16>
    %cst_13 = arith.constant dense<0.000000e+00> : vector<16x128xf32>
    %13 = tpu.matmul %10, %12, %cst_13 {dimension_numbers = #tpu.dot_dimension_numbers<[1], [0], [0], [1], [0, 0, 1, 1], [], []>} : vector<16x128xbf16>, vector<128x128xbf16>, vector<16x128xf32> -> vector<16x128xf32>
    %c1_14 = arith.constant 1 : index
    %c0_15 = arith.constant 0 : index
    %c0_16 = arith.constant 0 : index
    %14 = vector.load %arg3[%c1_14, %c0_15, %c0_16] : memref<5x1x128xf32, #tpu.memory_space<vmem>>, vector<1x1x128xf32>
    %15 = vector.shape_cast %14 : vector<1x1x128xf32> to vector<1x128xf32>
    %16 = vector.broadcast %15 : vector<1x128xf32> to vector<16x128xf32>
    %17 = arith.addf %13, %16 : vector<16x128xf32>
    %18 = arith.mulf %17, %17 : vector<16x128xf32>
    %19 = arith.mulf %17, %18 : vector<16x128xf32>
    %cst_17 = arith.constant 4.471500e-02 : f32
    %20 = vector.broadcast %cst_17 : f32 to vector<16x128xf32>
    %21 = arith.mulf %20, %19 : vector<16x128xf32>
    %22 = arith.addf %17, %21 : vector<16x128xf32>
    %cst_18 = arith.constant 0.797884583 : f32
    %23 = vector.broadcast %cst_18 : f32 to vector<16x128xf32>
    %24 = arith.mulf %23, %22 : vector<16x128xf32>
    %25 = math.tanh %24 : vector<16x128xf32>
    %cst_19 = arith.constant 1.000000e+00 : f32
    %26 = vector.broadcast %cst_19 : f32 to vector<16x128xf32>
    %27 = arith.addf %26, %25 : vector<16x128xf32>
    %cst_20 = arith.constant 5.000000e-01 : f32
    %28 = vector.broadcast %cst_20 : f32 to vector<16x128xf32>
    %29 = arith.mulf %28, %27 : vector<16x128xf32>
    %30 = arith.mulf %17, %29 : vector<16x128xf32>
    %31 = arith.truncf %30 : vector<16x128xf32> to vector<16x128xbf16>
    %c0_21 = arith.constant 0 : index
    %c0_22 = arith.constant 0 : index
    %32 = vector.load %arg5[%c0_21, %c0_22] : memref<16x128xbf16, #tpu.memory_space<vmem>>, vector<16x128xbf16>
    tpu.vector_store %arg5[%c0_21, %c0_22], %31 {strides = array<i32>} : memref<16x128xbf16, #tpu.memory_space<vmem>>, vector<16x128xbf16>,
    %c0_23 = arith.constant 0 : index
    %c0_24 = arith.constant 0 : index
    %33 = vector.load %arg5[%c0_23, %c0_24] : memref<16x128xbf16, #tpu.memory_space<vmem>>, vector<16x128xbf16>
    %c2 = arith.constant 2 : index
    %c0_25 = arith.constant 0 : index
    %c0_26 = arith.constant 0 : index
    %34 = vector.load %arg2[%c2, %c0_25, %c0_26] : memref<5x128x128xbf16, #tpu.memory_space<vmem>>, vector<1x128x128xbf16>
    %35 = vector.shape_cast %34 : vector<1x128x128xbf16> to vector<128x128xbf16>
    %cst_27 = arith.constant dense<0.000000e+00> : vector<16x128xf32>
    %36 = tpu.matmul %33, %35, %cst_27 {dimension_numbers = #tpu.dot_dimension_numbers<[1], [0], [0], [1], [0, 0, 1, 1], [], []>} : vector<16x128xbf16>, vector<128x128xbf16>, vector<16x128xf32> -> vector<16x128xf32>
    %c2_28 = arith.constant 2 : index
    %c0_29 = arith.constant 0 : index
    %c0_30 = arith.constant 0 : index
    %37 = vector.load %arg3[%c2_28, %c0_29, %c0_30] : memref<5x1x128xf32, #tpu.memory_space<vmem>>, vector<1x1x128xf32>
    %38 = vector.shape_cast %37 : vector<1x1x128xf32> to vector<1x128xf32>
    %39 = vector.broadcast %38 : vector<1x128xf32> to vector<16x128xf32>
    %40 = arith.addf %36, %39 : vector<16x128xf32>
    %41 = arith.mulf %40, %40 : vector<16x128xf32>
    %42 = arith.mulf %40, %41 : vector<16x128xf32>
    %cst_31 = arith.constant 4.471500e-02 : f32
    %43 = vector.broadcast %cst_31 : f32 to vector<16x128xf32>
    %44 = arith.mulf %43, %42 : vector<16x128xf32>
    %45 = arith.addf %40, %44 : vector<16x128xf32>
    %cst_32 = arith.constant 0.797884583 : f32
    %46 = vector.broadcast %cst_32 : f32 to vector<16x128xf32>
    %47 = arith.mulf %46, %45 : vector<16x128xf32>
    %48 = math.tanh %47 : vector<16x128xf32>
    %cst_33 = arith.constant 1.000000e+00 : f32
    %49 = vector.broadcast %cst_33 : f32 to vector<16x128xf32>
    %50 = arith.addf %49, %48 : vector<16x128xf32>
    %cst_34 = arith.constant 5.000000e-01 : f32
    %51 = vector.broadcast %cst_34 : f32 to vector<16x128xf32>
    %52 = arith.mulf %51, %50 : vector<16x128xf32>
    %53 = arith.mulf %40, %52 : vector<16x128xf32>
    %54 = arith.truncf %53 : vector<16x128xf32> to vector<16x128xbf16>
    %c0_35 = arith.constant 0 : index
    %c0_36 = arith.constant 0 : index
    %55 = vector.load %arg5[%c0_35, %c0_36] : memref<16x128xbf16, #tpu.memory_space<vmem>>, vector<16x128xbf16>
    tpu.vector_store %arg5[%c0_35, %c0_36], %54 {strides = array<i32>} : memref<16x128xbf16, #tpu.memory_space<vmem>>, vector<16x128xbf16>,
    %c0_37 = arith.constant 0 : index
    %c0_38 = arith.constant 0 : index
    %56 = vector.load %arg5[%c0_37, %c0_38] : memref<16x128xbf16, #tpu.memory_space<vmem>>, vector<16x128xbf16>
    %c3 = arith.constant 3 : index
    %c0_39 = arith.constant 0 : index
    %c0_40 = arith.constant 0 : index
    %57 = vector.load %arg2[%c3, %c0_39, %c0_40] : memref<5x128x128xbf16, #tpu.memory_space<vmem>>, vector<1x128x128xbf16>
    %58 = vector.shape_cast %57 : vector<1x128x128xbf16> to vector<128x128xbf16>
    %cst_41 = arith.constant dense<0.000000e+00> : vector<16x128xf32>
    %59 = tpu.matmul %56, %58, %cst_41 {dimension_numbers = #tpu.dot_dimension_numbers<[1], [0], [0], [1], [0, 0, 1, 1], [], []>} : vector<16x128xbf16>, vector<128x128xbf16>, vector<16x128xf32> -> vector<16x128xf32>
    %c3_42 = arith.constant 3 : index
    %c0_43 = arith.constant 0 : index
    %c0_44 = arith.constant 0 : index
    %60 = vector.load %arg3[%c3_42, %c0_43, %c0_44] : memref<5x1x128xf32, #tpu.memory_space<vmem>>, vector<1x1x128xf32>
    %61 = vector.shape_cast %60 : vector<1x1x128xf32> to vector<1x128xf32>
    %62 = vector.broadcast %61 : vector<1x128xf32> to vector<16x128xf32>
    %63 = arith.addf %59, %62 : vector<16x128xf32>
    %64 = arith.mulf %63, %63 : vector<16x128xf32>
    %65 = arith.mulf %63, %64 : vector<16x128xf32>
    %cst_45 = arith.constant 4.471500e-02 : f32
    %66 = vector.broadcast %cst_45 : f32 to vector<16x128xf32>
    %67 = arith.mulf %66, %65 : vector<16x128xf32>
    %68 = arith.addf %63, %67 : vector<16x128xf32>
    %cst_46 = arith.constant 0.797884583 : f32
    %69 = vector.broadcast %cst_46 : f32 to vector<16x128xf32>
    %70 = arith.mulf %69, %68 : vector<16x128xf32>
    %71 = math.tanh %70 : vector<16x128xf32>
    %cst_47 = arith.constant 1.000000e+00 : f32
    %72 = vector.broadcast %cst_47 : f32 to vector<16x128xf32>
    %73 = arith.addf %72, %71 : vector<16x128xf32>
    %cst_48 = arith.constant 5.000000e-01 : f32
    %74 = vector.broadcast %cst_48 : f32 to vector<16x128xf32>
    %75 = arith.mulf %74, %73 : vector<16x128xf32>
    %76 = arith.mulf %63, %75 : vector<16x128xf32>
    %77 = arith.truncf %76 : vector<16x128xf32> to vector<16x128xbf16>
    %c0_49 = arith.constant 0 : index
    %c0_50 = arith.constant 0 : index
    %78 = vector.load %arg5[%c0_49, %c0_50] : memref<16x128xbf16, #tpu.memory_space<vmem>>, vector<16x128xbf16>
    tpu.vector_store %arg5[%c0_49, %c0_50], %77 {strides = array<i32>} : memref<16x128xbf16, #tpu.memory_space<vmem>>, vector<16x128xbf16>,
    %c0_51 = arith.constant 0 : index
    %c0_52 = arith.constant 0 : index
    %79 = vector.load %arg5[%c0_51, %c0_52] : memref<16x128xbf16, #tpu.memory_space<vmem>>, vector<16x128xbf16>
    %c4 = arith.constant 4 : index
    %c0_53 = arith.constant 0 : index
    %c0_54 = arith.constant 0 : index
    %80 = vector.load %arg2[%c4, %c0_53, %c0_54] : memref<5x128x128xbf16, #tpu.memory_space<vmem>>, vector<1x128x128xbf16>
    %81 = vector.shape_cast %80 : vector<1x128x128xbf16> to vector<128x128xbf16>
    %cst_55 = arith.constant dense<0.000000e+00> : vector<16x128xf32>
    %82 = tpu.matmul %79, %81, %cst_55 {dimension_numbers = #tpu.dot_dimension_numbers<[1], [0], [0], [1], [0, 0, 1, 1], [], []>} : vector<16x128xbf16>, vector<128x128xbf16>, vector<16x128xf32> -> vector<16x128xf32>
    %c4_56 = arith.constant 4 : index
    %c0_57 = arith.constant 0 : index
    %c0_58 = arith.constant 0 : index
    %83 = vector.load %arg3[%c4_56, %c0_57, %c0_58] : memref<5x1x128xf32, #tpu.memory_space<vmem>>, vector<1x1x128xf32>
    %84 = vector.shape_cast %83 : vector<1x1x128xf32> to vector<1x128xf32>
    %85 = vector.broadcast %84 : vector<1x128xf32> to vector<16x128xf32>
    %86 = arith.addf %82, %85 : vector<16x128xf32>
    %c0_59 = arith.constant 0 : index
    %c0_60 = arith.constant 0 : index
    %87 = vector.load %arg4[%c0_59, %c0_60] : memref<16x128xf32, #tpu.memory_space<vmem>>, vector<16x128xf32>
    tpu.vector_store %arg4[%c0_59, %c0_60], %86 {strides = array<i32>} : memref<16x128xf32, #tpu.memory_space<vmem>>, vector<16x128xf32>,
    return
  }
  func.func @transform_0(%arg0: i32) -> (i32, i32) {
    %c0_i32 = arith.constant 0 : i32
    %c0_i32_0 = arith.constant 0 : i32
    return %arg0, %c0_i32 : i32, i32
  }
  func.func @transform_1(%arg0: i32) -> (i32, i32, i32) {
    %c0_i32 = arith.constant 0 : i32
    %c0_i32_0 = arith.constant 0 : i32
    %c0_i32_1 = arith.constant 0 : i32
    %c0_i32_2 = arith.constant 0 : i32
    return %c0_i32, %c0_i32_0, %c0_i32_1 : i32, i32, i32
  }
  func.func @transform_2(%arg0: i32) -> (i32, i32, i32) {
    %c0_i32 = arith.constant 0 : i32
    %c0_i32_0 = arith.constant 0 : i32
    %c0_i32_1 = arith.constant 0 : i32
    %c0_i32_2 = arith.constant 0 : i32
    return %c0_i32, %c0_i32_0, %c0_i32_1 : i32, i32, i32
  }
  func.func @transform_3(%arg0: i32) -> (i32, i32) {
    %c0_i32 = arith.constant 0 : i32
    %c0_i32_0 = arith.constant 0 : i32
    return %arg0, %c0_i32 : i32, i32
  }
}

</mosaic_0001>

<bundles_post_ra>
// kernel: fused_part_forward.1
= control target key start
LH: loop header
LB: loop body
LE: loop exit
PB: predicated region body
PF: predicated region fallthrough
CT: control target
= control target key end

     0   :  { %8 = vsyncpa [#allocation4], 0  ;;  %s954_s0 = inlined_call_operand.vmem [shape: bf16[16,128], index: 0, kind: input, shape index: {}]   ;;  %s955_s1 = inlined_call_operand.hbm [shape: bf16[5,128,128], index: 1, kind: input, shape index: {}]   ;;  %s956_s2 = inlined_call_operand.vmem [shape: f32[5,1,128], index: 2, kind: input, shape index: {}]   ;;  %s957_s3 = inlined_call_operand.hbm [shape: f32[16,128], index: 3, kind: output, shape index: {}]  }
   0x1   :  { %9 = vsyncpa [#allocation5], 0  ;;  %s16_s14 = sshll.u32 %s955_s1, 4  ;;  %s904_s15 = smov [#allocation3]   ;;  %s17_s14 = int_to_ptr.hbm [resolvable:$true] %s16_s14 }
   0x2   :  { %s18_s16 = sshll.u32 %s904_s15, 4  ;;  %s905_s17 = smov 64   ;;  %s19_s16 = int_to_ptr.vmem [resolvable:$true] %s18_s16 }
   0x3   :  { %s906_s18 = smov 4  }
   0x4   :  { %24 = dma.hbm_to_vmem [thread:$0]  %s17_s14, 5120, %s19_s16, [#allocation4], %s905_s17, %s905_s17, %s906_s18  }
   0x5   :  { %900 = dma.done.wait [#allocation4], 5120  }
   0x6   :  { %901 = vsyncadd [#allocation4], 4294962176  ;;  %v772_v0 = vld [vmem:[#allocation3 + $0x38] sm:$0xff]  ;;  %v771_v1 = vld [vmem:[#allocation3 + $0x30] sm:$0xff]  ;;  %s907_s29 = smov [#allocation6]   ;;  %s567_s6 = sshll.u32 %s957_s3, 4  ;;  %s568_s6 = int_to_ptr.hbm [resolvable:$true] %s567_s6 }
   0x7   :  { %107 = vmatpush.bf16.msra.mxu0 %v772_v0  ;;  %v781_v2 = vld [vmem:[#allocation3 + $0x78] sm:$0xff]  ;;  %v780_v3 = vld [vmem:[#allocation3 + $0x70] sm:$0xff]  ;;  %v770_v4 = vld [vmem:[#allocation3 + $0x28] sm:$0xff]  ;;  %s565_s30 = sshll.u32 %s907_s29, 4  ;;  %s908_s7 = smov 128   ;;  %s566_s30 = int_to_ptr.vmem [resolvable:$true] %s565_s30 }
   0x8   :  { %203 = vmatpush.bf16.msra.mxu1 %v781_v2  ;;  %v769_v5 = vld [vmem:[#allocation3 + $0x20] sm:$0xff]  ;;  %v768_v6 = vld [vmem:[#allocation3 + $0x18] sm:$0xff]  ;;  %v767_v7 = vld [vmem:[#allocation3 + $0x10] sm:$0xff]  ;;  %s909_s8 = smov 8  }
   0x9   :  { %v766_v8 = vld [vmem:[#allocation3 + $0x8] sm:$0xff]  ;;  %v765_v9 = vld [vmem:[#allocation3] sm:$0xff]  ;;  %v764_v10 = vld [vmem:[%s954_s0] sm:$0xff] }
   0xa   :  { %v779_v11 = vld [vmem:[#allocation3 + $0x68] sm:$0xff]  ;;  %v778_v12 = vld [vmem:[#allocation3 + $0x60] sm:$0xff]  ;;  %v777_v13 = vld [vmem:[#allocation3 + $0x58] sm:$0xff] }
   0xb   :  { %108 = vmatpush.bf16.msra.mxu0 %v771_v1  ;;  %v776_v14 = vld [vmem:[#allocation3 + $0x50] sm:$0xff]  ;;  %v775_v15 = vld [vmem:[#allocation3 + $0x48] sm:$0xff]  ;;  %v774_v16 = vld [vmem:[#allocation3 + $0x40] sm:$0xff] }
   0xc   :  { %204 = vmatpush.bf16.msra.mxu1 %v780_v3  ;;  %v835_v18 = vld [vmem:[%s956_s2] ss:$0 sm:$0xff]  ;;  %v789_v25 = vld [vmem:[#allocation3 + $0xb0] sm:$0xff]  ;;  %v788_v26 = vld [vmem:[#allocation3 + $0xa8] sm:$0xff] }
   0xd   :  { %v790_v24 = vld [vmem:[#allocation3 + $0xb8] sm:$0xff]  ;;  %v787_v27 = vld [vmem:[#allocation3 + $0xa0] sm:$0xff]  ;;  %v785_v31 = vld [vmem:[#allocation3 + $0x90] sm:$0xff] }
   0xe   :  { %317 = vmatpush.bf16.msra.mxu2 %v790_v24  ;;  %v786_v28 = vld [vmem:[#allocation3 + $0x98] sm:$0xff]  ;;  %v784_v34 = vld [vmem:[#allocation3 + $0x88] sm:$0xff]  ;;  %v783_v36 = vld [vmem:[#allocation3 + $0x80] sm:$0xff] }
   0xf   :  { %109 = vmatpush.bf16.msra.mxu0 %v770_v4  ;;  %v836_v29 = vld [vmem:[%s956_s2 + $0x1] ss:$0 sm:$0xff]  ;;  %v798_v58 = vld [vmem:[#allocation3 + $0xf0] sm:$0xff]  ;;  %v797_v59 = vld [vmem:[#allocation3 + $0xe8] sm:$0xff] }
  0x10   :  { %205 = vmatpush.bf16.msra.mxu1 %v779_v11  ;;  %v799_v57 = vld [vmem:[#allocation3 + $0xf8] sm:$0xff]  ;;  %v796_v60 = vld [vmem:[#allocation3 + $0xe0] sm:$0xff]  ;;  %v794_v0 = vld [vmem:[#allocation3 + $0xd0] sm:$0xff] }
  0x11   :  { %431 = vmatpush.bf16.msra.mxu3 %v799_v57  ;;  %v795_v61 = vld [vmem:[#allocation3 + $0xd8] sm:$0xff]  ;;  %v793_v3 = vld [vmem:[#allocation3 + $0xc8] sm:$0xff] }
  0x12   :  { %318 = vmatpush.bf16.msra.mxu2 %v789_v25  ;;  %v837_v62 = vld [vmem:[%s956_s2 + $0x2] ss:$0 sm:$0xff] }
  0x13   :  { %110 = vmatpush.bf16.msra.mxu0 %v769_v5  ;;  %v792_v5 = vld [vmem:[#allocation3 + $0xc0] sm:$0xff] }
  0x14   :  { %206 = vmatpush.bf16.msra.mxu1 %v778_v12 }
  0x15   :  { %432 = vmatpush.bf16.msra.mxu3 %v798_v58 }
  0x16   :  { %319 = vmatpush.bf16.msra.mxu2 %v788_v26  ;;  %v808_v26 = vld [vmem:[#allocation3 + $0x138] sm:$0xff] }
  0x17   :  { %111 = vmatpush.bf16.msra.mxu0 %v768_v6 }
  0x18   :  { %207 = vmatpush.bf16.msra.mxu1 %v777_v13 }
  0x19   :  { %433 = vmatpush.bf16.msra.mxu3 %v797_v59  ;;  %v839_v59 = vld [vmem:[%s956_s2 + $0x4] ss:$0 sm:$0xff] }
  0x1a   :  { %320 = vmatpush.bf16.msra.mxu2 %v787_v27  ;;  %v807_v27 = vld [vmem:[#allocation3 + $0x130] sm:$0xff] }
  0x1b   :  { %112 = vmatpush.bf16.msra.mxu0 %v767_v7 }
  0x1c   :  { %208 = vmatpush.bf16.msra.mxu1 %v776_v14 }
  0x1d   :  { %434 = vmatpush.bf16.msra.mxu3 %v796_v60 }
  0x1e   :  { %321 = vmatpush.bf16.msra.mxu2 %v786_v28  ;;  %v806_v28 = vld [vmem:[#allocation3 + $0x128] sm:$0xff] }
  0x1f   :  { %113 = vmatpush.bf16.msra.mxu0 %v766_v8 }
  0x20   :  { %209 = vmatpush.bf16.msra.mxu1 %v775_v15 }
  0x21   :  { %435 = vmatpush.bf16.msra.mxu3 %v795_v61 }
  0x22   :  { %322 = vmatpush.bf16.msra.mxu2 %v785_v31  ;;  %v838_v31 = vld [vmem:[%s956_s2 + $0x3] ss:$0 sm:$0xff] }
  0x23   :  { %114 = vmatpush.bf16.msra.mxu0 %v765_v9 }
  0x24   :  { %210 = vmatpush.bf16.msra.mxu1 %v774_v16 }
  0x25   :  { %436 = vmatpush.bf16.msra.mxu3 %v794_v0 }
  0x26   :  { %115 = vmatmul.bf16.vlgmr.msra.gmra.mxu0 %v764_v10  ;;  %323 = vmatpush.bf16.msra.mxu2 %v784_v34 }
  0x27   :  { %545 = vmatpush.bf16.msrb.mxu0 %v808_v26 }
  0x29   :  { %437 = vmatpush.bf16.msra.mxu3 %v793_v3 }
  0x2a   :  { %324 = vmatpush.bf16.msra.mxu2 %v783_v36  ;;  %v802_v36 = vld [vmem:[#allocation3 + $0x108] sm:$0xff] }
  0x2b   :  { %546 = vmatpush.bf16.msrb.mxu0 %v807_v27 }
  0x2d   :  { %438 = vmatpush.bf16.msra.mxu3 %v792_v5 }
  0x2f   :  { %547 = vmatpush.bf16.msrb.mxu0 %v806_v28 }
  0xa3   :  { %v116_v17 = vpop.f32.mrf.mxu0 }
  0xa4   :  { %v117_v20 = vadd.f32 %v835_v18, %v116_v17 }
  0xab   :  { %v118_v19 = vpop.f32.mrf.mxu0 }
  0xac   :  { %v119_v21 = vadd.f32 %v835_v18, %v118_v19 }
  0xae   :  { %v812_v22 = vpack.c.bf16 %v119_v21, %v117_v20 }
  0xb0   :  { %813 = vst [vmem:[#allocation2] sm:$0xff] %v812_v22  }
  0xb7   :  { %v773_v23 = vld [vmem:[#allocation2] sm:$0xff] }
  0xb8   :  { %211 = vmatmul.bf16.vlgmr.msra.gmra.mxu1 %v773_v23 }
 0x135   :  { %v212_v30 = vpop.f32.mrf.mxu1 }
 0x136   :  { %v213_v32 = vadd.f32 %v836_v29, %v212_v30  ;;  %v804_v30 = vld [vmem:[#allocation3 + $0x118] sm:$0xff] }
 0x138   :  { %v217_v33 = vmul.f32 %v213_v32, %v213_v32 }
 0x13a   :  { %v219_v35 = vmul.f32 %v217_v33, %v213_v32  ;;  %v803_v33 = vld [vmem:[#allocation3 + $0x110] sm:$0xff] }
 0x13c   :  { %v221_v37 = vmul.f32 0.044715, %v219_v35 }
 0x13d   :  { %v214_v38 = vpop.f32.mrf.mxu1 }
 0x13e   :  { %v223_v39 = vadd.f32 %v221_v37, %v213_v32  ;;  %v215_v40 = vadd.f32 %v836_v29, %v214_v38  ;;  %v805_v29 = vld [vmem:[#allocation3 + $0x120] sm:$0xff] }
 0x13f   :  { %548 = vmatpush.bf16.msrb.mxu0 %v805_v29  ;;  %v801_v38 = vld [vmem:[#allocation3 + $0x100] sm:$0xff] }
 0x140   :  { %v225_v41 = vmul.f32 0.7978846, %v223_v39  ;;  %v218_v42 = vmul.f32 %v215_v40, %v215_v40 }
 0x142   :  { %v220_v43 = vmul.f32 %v218_v42, %v215_v40  ;;  %840 = vtanh.f32 %v225_v41 }
 0x143   :  { %549 = vmatpush.bf16.msrb.mxu0 %v804_v30 }
 0x144   :  { %v222_v44 = vmul.f32 0.044715, %v220_v43 }
 0x146   :  { %v224_v45 = vadd.f32 %v222_v44, %v215_v40 }
 0x147   :  { %550 = vmatpush.bf16.msrb.mxu0 %v803_v33 }
 0x148   :  { %v226_v46 = vmul.f32 0.7978846, %v224_v45  ;;  %v841_v47 = vpop.eup %840 }
 0x149   :  { %v229_v48 = vadd.f32 1.0, %v841_v47 }
 0x14a   :  { %842 = vtanh.f32 %v226_v46 }
 0x14b   :  { %v231_v50 = vmul.f32 0.5, %v229_v48  ;;  %551 = vmatpush.bf16.msrb.mxu0 %v802_v36 }
 0x14d   :  { %v233_v53 = vmul.f32 %v231_v50, %v213_v32 }
 0x14f   :  { %552 = vmatpush.bf16.msrb.mxu0 %v801_v38 }
 0x150   :  { %v843_v49 = vpop.eup %842 }
 0x151   :  { %v230_v51 = vadd.f32 1.0, %v843_v49 }
 0x153   :  { %v232_v52 = vmul.f32 0.5, %v230_v51 }
 0x155   :  { %v234_v54 = vmul.f32 %v232_v52, %v215_v40 }
 0x157   :  { %v817_v55 = vpack.c.bf16 %v234_v54, %v233_v53 }
 0x159   :  { %818 = vst [vmem:[#allocation2] sm:$0xff] %v817_v55  }
 0x160   :  { %v782_v56 = vld [vmem:[#allocation2] sm:$0xff] }
 0x161   :  { %325 = vmatmul.bf16.vlgmr.msra.gmra.mxu2 %v782_v56 }
 0x1e4   :  { %v326_v63 = vpop.f32.mrf.mxu2 }
 0x1e5   :  { %v327_v1 = vadd.f32 %v837_v62, %v326_v63 }
 0x1e7   :  { %v331_v2 = vmul.f32 %v327_v1, %v327_v1 }
 0x1e9   :  { %v333_v4 = vmul.f32 %v331_v2, %v327_v1 }
 0x1eb   :  { %v335_v6 = vmul.f32 0.044715, %v333_v4 }
 0x1ec   :  { %v328_v7 = vpop.f32.mrf.mxu2 }
 0x1ed   :  { %v337_v8 = vadd.f32 %v335_v6, %v327_v1  ;;  %v329_v9 = vadd.f32 %v837_v62, %v328_v7 }
 0x1ef   :  { %v339_v10 = vmul.f32 0.7978846, %v337_v8  ;;  %v332_v11 = vmul.f32 %v329_v9, %v329_v9 }
 0x1f1   :  { %v334_v12 = vmul.f32 %v332_v11, %v329_v9  ;;  %844 = vtanh.f32 %v339_v10 }
 0x1f3   :  { %v336_v13 = vmul.f32 0.044715, %v334_v12 }
 0x1f5   :  { %v338_v14 = vadd.f32 %v336_v13, %v329_v9 }
 0x1f7   :  { %v340_v15 = vmul.f32 0.7978846, %v338_v14  ;;  %v845_v16 = vpop.eup %844 }
 0x1f8   :  { %v343_v17 = vadd.f32 1.0, %v845_v16 }
 0x1f9   :  { %846 = vtanh.f32 %v340_v15 }
 0x1fa   :  { %v345_v19 = vmul.f32 0.5, %v343_v17 }
 0x1fc   :  { %v347_v22 = vmul.f32 %v345_v19, %v327_v1 }
 0x1ff   :  { %v847_v18 = vpop.eup %846 }
 0x200   :  { %v344_v20 = vadd.f32 1.0, %v847_v18 }
 0x202   :  { %v346_v21 = vmul.f32 0.5, %v344_v20 }
 0x204   :  { %v348_v23 = vmul.f32 %v346_v21, %v329_v9 }
 0x206   :  { %v822_v24 = vpack.c.bf16 %v348_v23, %v347_v22 }
 0x208   :  { %823 = vst [vmem:[#allocation2] sm:$0xff] %v822_v24  }
 0x20f   :  { %v791_v25 = vld [vmem:[#allocation2] sm:$0xff] }
 0x210   :  { %439 = vmatmul.bf16.vlgmr.msra.gmra.mxu3 %v791_v25 }
 0x293   :  { %v440_v32 = vpop.f32.mrf.mxu3 }
 0x294   :  { %v441_v34 = vadd.f32 %v838_v31, %v440_v32 }
 0x296   :  { %v445_v35 = vmul.f32 %v441_v34, %v441_v34 }
 0x298   :  { %v447_v37 = vmul.f32 %v445_v35, %v441_v34 }
 0x29a   :  { %v449_v39 = vmul.f32 0.044715, %v447_v37 }
 0x29b   :  { %v442_v40 = vpop.f32.mrf.mxu3 }
 0x29c   :  { %v451_v41 = vadd.f32 %v449_v39, %v441_v34  ;;  %v443_v42 = vadd.f32 %v838_v31, %v442_v40 }
 0x29e   :  { %v453_v43 = vmul.f32 0.7978846, %v451_v41  ;;  %v446_v44 = vmul.f32 %v443_v42, %v443_v42 }
 0x2a0   :  { %v448_v45 = vmul.f32 %v446_v44, %v443_v42  ;;  %848 = vtanh.f32 %v453_v43 }
 0x2a2   :  { %v450_v46 = vmul.f32 0.044715, %v448_v45 }
 0x2a4   :  { %v452_v47 = vadd.f32 %v450_v46, %v443_v42 }
 0x2a6   :  { %v454_v48 = vmul.f32 0.7978846, %v452_v47  ;;  %v849_v49 = vpop.eup %848 }
 0x2a7   :  { %v457_v50 = vadd.f32 1.0, %v849_v49 }
 0x2a8   :  { %850 = vtanh.f32 %v454_v48 }
 0x2a9   :  { %v459_v52 = vmul.f32 0.5, %v457_v50 }
 0x2ab   :  { %v461_v55 = vmul.f32 %v459_v52, %v441_v34 }
 0x2ae   :  { %v851_v51 = vpop.eup %850 }
 0x2af   :  { %v458_v53 = vadd.f32 1.0, %v851_v51 }
 0x2b1   :  { %v460_v54 = vmul.f32 0.5, %v458_v53 }
 0x2b3   :  { %v462_v56 = vmul.f32 %v460_v54, %v443_v42 }
 0x2b5   :  { %v827_v57 = vpack.c.bf16 %v462_v56, %v461_v55 }
 0x2b7   :  { %828 = vst [vmem:[#allocation2] sm:$0xff] %v827_v57  }
 0x2be   :  { %v800_v58 = vld [vmem:[#allocation2] sm:$0xff] }
 0x2bf   :  { %553 = vmatmul.bf16.vlgmr.msrb.gmra.mxu0 %v800_v58 }
 0x33c   :  { %v554_v60 = vpop.f32.mrf.mxu0 }
 0x33d   :  { %v555_v61 = vadd.f32 %v839_v59, %v554_v60 }
 0x33f   :  { %559 = vst [vmem:[#allocation6] sm:$0xff] %v555_v61 }
 0x344   :  { %v556_v62 = vpop.f32.mrf.mxu0 }
 0x345   :  { %v557_v63 = vadd.f32 %v839_v59, %v556_v62 }
 0x347   :  { %560 = vst [vmem:[#allocation6 + $0x8] sm:$0xff] %v557_v63 }
 0x348   :  { %573 = dma.vmem_to_hbm [thread:$0]  %s566_s30, 256, %s568_s6, [#allocation5], %s908_s7, %s908_s7, %s909_s8  }
 0x349   :  { %902 = dma.done.wait [#allocation5], 256  }
 0x34a   :  { %903 = vsyncadd [#allocation5], 4294967040 }
 0x34b   :  { %578 = vsyncpa [#allocation4], 1 }
 0x34c   :  { %579 = vsyncpa [#allocation5], 1 }

</bundles_post_ra>
